<compile_context>
chip_gen: v5e
topology: v5e:2x2
jax: 0.10.0
libtpu: 0.0.40
codegen_flags: <defaults>
</compile_context>

<pallas_src>
import functools
import math

import jax
import jax.numpy as jnp
from jax import lax
from jax.experimental import pallas as pl
from jax.experimental.pallas import tpu as pltpu

# ---- Linear_bnn hyper-parameters (init_type='fixed', regime=1, bias=False) ----------
IN_SIZE = 32
OUT_SIZE = 32
BATCH = 8
INIT_RHO_POST = -3.0      # init_rho_post with init_type='fixed'
INIT_MU_POST = 0.1        # init_mu_post  with init_type='fixed'
SIGMA_PRIOR = 1.0
MU_PRIOR = 0.0
# TODO(synk): bias=True path (second sample + KL term + bias add) and regime=2 are not
#             implemented; only the default bias=False, regime 1/3 forward is covered.
# TODO(synk): for real layer sizes, generate eps in-kernel with pltpu.prng_seed /
#             pltpu.prng_random_bits (cuts one weight-sized HBM stream) and fuse several
#             layers / MC samples behind one pallas_call to amortize launch overhead.

_LANE = 128      # lane (last-dim) tile width
_SUBLANE = 8     # sublane (second-to-last dim) tile width
_LOG_2PI = math.log(2.0 * math.pi)


def _round_up(n, m):
    return ((n + m - 1) // m) * m


def _bnn_linear_kernel(x_ref, mu_ref, rho_ref, eps_ref, out_ref, kl_ref,
                       *, mu_prior, sigma_prior):
    """Bayesian linear layer: sample w, accumulate KL, matmul.

    x_ref:   (Bp, INp)    f32
    mu_ref:  (OUTp, INp)  f32  variational posterior mean
    rho_ref: (OUTp, INp)  f32  variational posterior rho
    eps_ref: (OUTp, INp)  f32  standard-normal noise (reparameterization trick)
    out_ref: (Bp, OUTp)   f32  = x @ w.T   (F.linear, no bias)
    kl_ref:  (1, 1)       f32  SMEM scalar: sum log N(w;mu,sigma) - sum log N(w;mu_p,sigma_p)
    """
    mu = mu_ref[...]
    rho = rho_ref[...]
    eps = eps_ref[...]

    # rho_to_std, regime 1/3: where(rho < 50, log1p(exp(rho)), rho)
    sigma = jnp.where(rho < 50.0, jnp.log1p(jnp.exp(rho)), rho)

    # sample: w = mu + sigma * eps
    w = mu + sigma * eps

    # KL = sum log N(w; mu, sigma) - sum log N(w; mu_prior, sigma_prior)
    # Per element, using w - mu == sigma * eps and cancelling the 0.5*log(2*pi) terms:
    #   diff_e = 0.5*((w - mu_prior)/sigma_prior)^2 - log(sigma) - 0.5*eps^2 + log(sigma_prior)
    # Constants are hoisted to trace time; one fused reduction on the XLU.
    half_inv_var_prior = 0.5 / (sigma_prior * sigma_prior)   # trace-time Python float
    dw = w - mu_prior
    kl_sum = jnp.sum(half_inv_var_prior * (dw * dw) - jnp.log(sigma) - 0.5 * (eps * eps))
    numel = mu.shape[0] * mu.shape[1]                        # trace-time Python int
    kl_ref[0, 0] = kl_sum + jnp.float32(numel * math.log(sigma_prior))

    # F.linear(x, w, None) == x @ w.T: contract the last dims directly on the MXU,
    # no transpose/relayout of the freshly-built w tile.
    out_ref[...] = lax.dot_general(
        x_ref[...], w,
        dimension_numbers=(((1,), (1,)), ((), ())),
        preferred_element_type=jnp.float32)


def linear_bnn_forward(x, weight_mu, weight_rho, eps,
                       mu_prior=MU_PRIOR, sigma_prior=SIGMA_PRIOR):
    """Linear_bnn.forward (bias=False, regime=1): returns (out, appro_kl)."""
    b, in_size = x.shape
    out_size = weight_mu.shape[0]

    b_pad = _round_up(b, _SUBLANE)
    in_pad = _round_up(in_size, _LANE)
    out_pad = _round_up(out_size, _LANE)   # out is also the output lane dim -> keep 128-dense

    # KL-neutral padding: padded elements get sigma == sigma_prior, w == mu_prior,
    # eps == 0, so posterior and prior log-probs cancel exactly; x pads with zeros so
    # the padded in-columns contribute nothing to the matmul.
    rho_pad_val = math.log(math.expm1(sigma_prior))   # softplus^{-1}(sigma_prior)

    x_p = jnp.zeros((b_pad, in_pad), jnp.float32).at[:b, :in_size].set(x)
    mu_p = jnp.full((out_pad, in_pad), mu_prior, jnp.float32).at[:out_size, :in_size].set(weight_mu)
    rho_p = jnp.full((out_pad, in_pad), rho_pad_val, jnp.float32).at[:out_size, :in_size].set(weight_rho)
    eps_p = jnp.zeros((out_pad, in_pad), jnp.float32).at[:out_size, :in_size].set(eps)

    kernel = functools.partial(_bnn_linear_kernel,
                               mu_prior=float(mu_prior), sigma_prior=float(sigma_prior))

    out_p, kl = pl.pallas_call(
        kernel,
        out_shape=(
            jax.ShapeDtypeStruct((b_pad, out_pad), jnp.float32),
            jax.ShapeDtypeStruct((1, 1), jnp.float32),
        ),
        in_specs=[pl.BlockSpec(memory_space=pltpu.MemorySpace.VMEM)] * 4,
        out_specs=(
            pl.BlockSpec(memory_space=pltpu.MemorySpace.VMEM),
            pl.BlockSpec(memory_space=pltpu.MemorySpace.SMEM),
        ),
    )(x_p, mu_p, rho_p, eps_p)

    return out_p[:b, :out_size], kl[0, 0]


def _reference(x, weight_mu, weight_rho, eps, mu_prior=MU_PRIOR, sigma_prior=SIGMA_PRIOR):
    """Pure-JAX reference matching the original PyTorch formulation (unpadded)."""
    sigma = jnp.where(weight_rho < 50.0, jnp.log1p(jnp.exp(weight_rho)), weight_rho)
    w = weight_mu + sigma * eps
    log_var_post = jnp.sum(
        -jnp.log(sigma) - 0.5 * _LOG_2PI - (w - weight_mu) ** 2 / (2.0 * sigma * sigma)
    )
    log_prior = jnp.sum(
        -math.log(sigma_prior) - 0.5 * _LOG_2PI
        - (w - mu_prior) ** 2 / (2.0 * sigma_prior * sigma_prior)
    )
    return x @ w.T, log_var_post - log_prior


if __name__ == "__main__":
    key = jax.random.PRNGKey(0)
    k_x, k_eps = jax.random.split(key)

    # Deterministic parameter init (init_type='fixed'): ones * init_value.
    weight_mu = jnp.full((OUT_SIZE, IN_SIZE), INIT_MU_POST, dtype=jnp.float32)
    weight_rho = jnp.full((OUT_SIZE, IN_SIZE), INIT_RHO_POST, dtype=jnp.float32)

    x = jax.random.normal(k_x, (BATCH, IN_SIZE), dtype=jnp.float32)
    eps = jax.random.normal(k_eps, (OUT_SIZE, IN_SIZE), dtype=jnp.float32)

    out, appro_kl = linear_bnn_forward(x, weight_mu, weight_rho, eps)
    jax.block_until_ready((out, appro_kl))

    out_ref, kl_ref = _reference(x, weight_mu, weight_rho, eps)
    assert out.shape == (BATCH, OUT_SIZE)
    assert jnp.allclose(out, out_ref, atol=1e-4, rtol=1e-4), "matmul mismatch"
    assert jnp.allclose(appro_kl, kl_ref, atol=5e-2, rtol=2e-4), "KL mismatch"

    print("KERNEL_OK")
</pallas_src>

<mosaic_0001>
module attributes {stable_mosaic.version = 11 : i64} {
  func.func @_bnn_linear_kernel(%arg0: memref<8x128xf32, #tpu.memory_space<vmem>>, %arg1: memref<128x128xf32, #tpu.memory_space<vmem>>, %arg2: memref<128x128xf32, #tpu.memory_space<vmem>>, %arg3: memref<128x128xf32, #tpu.memory_space<vmem>>, %arg4: memref<8x128xf32, #tpu.memory_space<vmem>>, %arg5: memref<1x1xf32, #tpu.memory_space<smem>>) attributes {dimension_semantics = [], scalar_prefetch = 0 : i64, scratch_operands = 0 : i64, tpu.core_type = #tpu.core_type<tc>} {
    %c0 = arith.constant 0 : index
    %c0_0 = arith.constant 0 : index
    %0 = vector.load %arg1[%c0, %c0_0] : memref<128x128xf32, #tpu.memory_space<vmem>>, vector<128x128xf32>
    %c0_1 = arith.constant 0 : index
    %c0_2 = arith.constant 0 : index
    %1 = vector.load %arg2[%c0_1, %c0_2] : memref<128x128xf32, #tpu.memory_space<vmem>>, vector<128x128xf32>
    %c0_3 = arith.constant 0 : index
    %c0_4 = arith.constant 0 : index
    %2 = vector.load %arg3[%c0_3, %c0_4] : memref<128x128xf32, #tpu.memory_space<vmem>>, vector<128x128xf32>
    %cst = arith.constant 5.000000e+01 : f32
    %3 = vector.broadcast %cst : f32 to vector<128x128xf32>
    %4 = arith.cmpf olt, %1, %3 : vector<128x128xf32>
    %5 = math.exp %1 : vector<128x128xf32>
    %6 = math.log1p %5 : vector<128x128xf32>
    %7 = arith.select %4, %6, %1 : vector<128x128xi1>, vector<128x128xf32>
    %8 = arith.mulf %7, %2 : vector<128x128xf32>
    %9 = arith.addf %0, %8 : vector<128x128xf32>
    %cst_5 = arith.constant 0.000000e+00 : f32
    %10 = vector.broadcast %cst_5 : f32 to vector<128x128xf32>
    %11 = arith.subf %9, %10 : vector<128x128xf32>
    %12 = arith.mulf %11, %11 : vector<128x128xf32>
    %cst_6 = arith.constant 5.000000e-01 : f32
    %13 = vector.broadcast %cst_6 : f32 to vector<128x128xf32>
    %14 = arith.mulf %13, %12 : vector<128x128xf32>
    %15 = math.log %7 : vector<128x128xf32>
    %16 = arith.subf %14, %15 : vector<128x128xf32>
    %17 = arith.mulf %2, %2 : vector<128x128xf32>
    %cst_7 = arith.constant 5.000000e-01 : f32
    %18 = vector.broadcast %cst_7 : f32 to vector<128x128xf32>
    %19 = arith.mulf %18, %17 : vector<128x128xf32>
    %20 = arith.subf %16, %19 : vector<128x128xf32>
    %21 = vector.shape_cast %20 : vector<128x128xf32> to vector<1x128x128xf32>
    %cst_8 = arith.constant dense<0.000000e+00> : vector<1xf32>
    %22 = vector.multi_reduction <add>, %21, %cst_8 [1, 2] : vector<1x128x128xf32> to vector<1xf32>
    %23 = vector.shape_cast %22 : vector<1xf32> to vector<1x1x1xf32>
    %24 = vector.extract %23[0, 0, 0] : f32 from vector<1x1x1xf32>
    %cst_9 = arith.constant 0.000000e+00 : f32
    %25 = arith.addf %24, %cst_9 : f32
    %c0_10 = arith.constant 0 : index
    %c0_11 = arith.constant 0 : index
    %26 = memref.load %arg5[%c0_10, %c0_11] : memref<1x1xf32, #tpu.memory_space<smem>>
    memref.store %25, %arg5[%c0_10, %c0_11] : memref<1x1xf32, #tpu.memory_space<smem>>
    %c0_12 = arith.constant 0 : index
    %c0_13 = arith.constant 0 : index
    %27 = vector.load %arg0[%c0_12, %c0_13] : memref<8x128xf32, #tpu.memory_space<vmem>>, vector<8x128xf32>
    %cst_14 = arith.constant dense<0.000000e+00> : vector<8x128xf32>
    %28 = tpu.matmul %27, %9, %cst_14 {dimension_numbers = #tpu.dot_dimension_numbers<[1], [1], [0], [0], [0, 0, 1, 0], [], []>} : vector<8x128xf32>, vector<128x128xf32>, vector<8x128xf32> -> vector<8x128xf32>
    %c0_15 = arith.constant 0 : index
    %c0_16 = arith.constant 0 : index
    %29 = vector.load %arg4[%c0_15, %c0_16] : memref<8x128xf32, #tpu.memory_space<vmem>>, vector<8x128xf32>
    tpu.vector_store %arg4[%c0_15, %c0_16], %28 {strides = array<i32>} : memref<8x128xf32, #tpu.memory_space<vmem>>, vector<8x128xf32>,
    return
  }
}

</mosaic_0001>

<bundles_post_ra>
// kernel: tpu_custom_call.1
= control target key start
LH: loop header
LB: loop body
LE: loop exit
PB: predicated region body
PF: predicated region fallthrough
CT: control target
= control target key end

     0   :  { %11 = vsyncpa [#allocation3], 0  ;;  %s1419_s0 = inlined_call_operand.hbm [shape: f32[8,128], index: 0, kind: input, shape index: {}]   ;;  %s1420_s1 = inlined_call_operand.hbm [shape: f32[128,128], index: 1, kind: input, shape index: {}]   ;;  %s1421_s2 = inlined_call_operand.hbm [shape: f32[128,128], index: 2, kind: input, shape index: {}]   ;;  %s1422_s3 = inlined_call_operand.hbm [shape: f32[128,128], index: 3, kind: input, shape index: {}]   ;;  %s1423_s4 = inlined_call_operand.hbm [shape: f32[8,128], index: 4, kind: output, shape index: {0}]   ;;  %s1424_s5 = inlined_call_operand.hbm [shape: f32[1,1], index: 5, kind: output, shape index: {1}]  }
   0x1   :  { %12 = vsyncpa [#allocation7], 0 }
   0x2   :  { %13 = vsyncpa [#allocation10], 0 }
   0x3   :  { %14 = vsyncpa [#allocation4], 0  ;;  %s31_s20 = sshll.u32 %s1420_s1, 4  ;;  %s32_s20 = int_to_ptr.hbm [resolvable:$true] %s31_s20 }
   0x4   :  { %15 = vsyncpa [#allocation5], 0  ;;  %s829_s21 = smov [#allocation6]   ;;  %s21_s25 = sshll.u32 %s1419_s0, 4  ;;  %s22_s25 = int_to_ptr.hbm [resolvable:$true] %s21_s25 }
   0x5   :  { %s33_s22 = sshll.u32 %s829_s21, 4  ;;  %s830_s26 = smov 128   ;;  %s34_s22 = int_to_ptr.vmem [resolvable:$true] %s33_s22 }
   0x6   :  { %s831_s27 = smov 8   ;;  %s832_s28 = smov [#allocation2]  }
   0x7   :  { %39 = dma.hbm_to_vmem [thread:$0]  %s32_s20, 2048, %s34_s22, [#allocation7], %s830_s26, %s830_s26, %s831_s27  }
   0x8   :  { %s23_s29 = sshll.u32 %s832_s28, 4  ;;  %s44_s7 = sshll.u32 %s1421_s2, 4  ;;  %s24_s29 = int_to_ptr.vmem [resolvable:$true] %s23_s29  ;;  %s45_s7 = int_to_ptr.hbm [resolvable:$true] %s44_s7 }
   0x9   :  { %26 = dma.hbm_to_vmem [thread:$0]  %s22_s25, 128, %s24_s29, [#allocation3]  }
   0xa   :  { %s57_s9 = sshll.u32 %s1422_s3, 4  ;;  %s833_s10 = smov [#allocation8]   ;;  %s58_s9 = int_to_ptr.hbm [resolvable:$true] %s57_s9 }
   0xb   :  { %s46_s11 = sshll.u32 %s833_s10, 4  ;;  %s834_s0 = smov [#allocation9]   ;;  %s47_s11 = int_to_ptr.vmem [resolvable:$true] %s46_s11 }
   0xc   :  { %52 = dma.hbm_to_vmem [thread:$0]  %s45_s7, 2048, %s47_s11, [#allocation7], %s830_s26, %s830_s26, %s831_s27  }
   0xd   :  { %s59_s12 = sshll.u32 %s834_s0, 4  ;;  %s60_s12 = int_to_ptr.vmem [resolvable:$true] %s59_s12 }
   0xe   :  { %65 = dma.hbm_to_vmem [thread:$0]  %s58_s9, 2048, %s60_s12, [#allocation10], %s830_s26, %s830_s26, %s831_s27  }
   0xf   :  { %819 = dma.done.wait [#allocation3], 128  }
  0x10   :  { %820 = vsyncadd [#allocation3], 4294967168 }
  0x11   :  { %821 = dma.done.wait [#allocation7], 4096  }
  0x12   :  { %822 = vsyncadd [#allocation7], 4294963200 }
  0x13   :  { %823 = dma.done.wait [#allocation10], 2048  }
  0x14   :  { %824 = vsyncadd [#allocation10], 4294965248  ;;  %v113_v0 = vld [vmem:[#allocation8 + $0x78] sm:$0xff]  ;;  %v112_v2 = vld [vmem:[#allocation8 + $0x70] sm:$0xff]  ;;  %s835_s2 = smov [#allocation11]   ;;  %s554_s15 = sshll.u32 %s1423_s4, 4  ;;  %s555_s15 = int_to_ptr.hbm [resolvable:$true] %s554_s15 }
  0x15   :  { %v176_v1 = vmul.f32 1.442695, %v113_v0  ;;  %v174_v3 = vmul.f32 1.442695, %v112_v2  ;;  %v111_v4 = vld [vmem:[#allocation8 + $0x68] sm:$0xff]  ;;  %vm145_vm1 = vcmp.lt.f32.partialorder %v113_v0, 50.0 }
  0x16   :  { %v172_v5 = vmul.f32 1.442695, %v111_v4  ;;  %v887_v30 = vld [vmem:[#allocation9 + $0x78] sm:$0xff]  ;;  %vm144_vm3 = vcmp.lt.f32.partialorder %v112_v2, 50.0  ;;  %vm143_vm5 = vcmp.lt.f32.partialorder %v111_v4, 50.0  ;;  %v895_v35 = vld [vmem:[#allocation8] sm:$0xff] }
  0x17   :  { %591 = vpow2.f32 %v176_v1  ;;  %1441 = vst [vmem:[#allocation18_spill] sm:$0xff] %v887_v30  ;;  %v97_v36 = vld [vmem:[#allocation6 + $0x78] sm:$0xff]  ;;  %v897_v38 = vld [vmem:[#allocation9 + $0x70] sm:$0xff]  ;;  %v901_v40 = vld [vmem:[#allocation9 + $0x68] sm:$0xff]  ;;  %v146_v48 = vmul.f32 1.442695, %v895_v35 }
  0x18   :  { %593 = vpow2.f32 %v174_v3  ;;  %1444 = vst [vmem:[#allocation19_spill] sm:$0xff] %v897_v38  ;;  %v906_v44 = vld [vmem:[#allocation8 + $0x8] sm:$0xff]  ;;  %v908_v47 = vld [vmem:[#allocation8 + $0x10] sm:$0xff]  ;;  %v914_v55 = vld [vmem:[#allocation8 + $0x18] sm:$0xff]  ;;  %s552_s3 = sshll.u32 %s835_s2, 4  ;;  %s563_s18 = sshll.u32 %s1424_s5, 4  ;;  %s553_s3 = int_to_ptr.vmem [resolvable:$true] %s552_s3  ;;  %s564_s18 = int_to_ptr.hbm [resolvable:$true] %s563_s18 }
  0x19   :  { %595 = vpow2.f32 %v172_v5  ;;  %v95_v45 = vld [vmem:[#allocation6 + $0x68] sm:$0xff]  ;;  %v96_v52 = vld [vmem:[#allocation6 + $0x70] sm:$0xff]  ;;  %v148_v53 = vmul.f32 1.442695, %v906_v44  ;;  %v150_v56 = vmul.f32 1.442695, %v908_v47 }
  0x1a   :  { %v917_v57 = vld [vmem:[#allocation8 + $0x20] sm:$0xff]  ;;  %v919_v60 = vld [vmem:[#allocation8 + $0x28] sm:$0xff]  ;;  %v921_v61 = vld [vmem:[#allocation8 + $0x30] sm:$0xff]  ;;  %v152_v62 = vmul.f32 1.442695, %v914_v55  ;;  %s836_s20 = smov [#allocation12]  }
  0x1b   :  { %1445 = vst [vmem:[#allocation20_spill] sm:$0xff] %v921_v61  ;;  %v926_v1 = vld [vmem:[#allocation8 + $0x38] sm:$0xff]  ;;  %v156_v5 = vmul.f32 1.442695, %v919_v60 }
  0x1c   :  { %1447 = vst [vmem:[#allocation22_spill] sm:$0xff] %v926_v1 }
  0x1d   :  { %v592_v6 = vpop.eup %591 }
  0x1e   :  { %v594_v7 = vpop.eup %593  ;;  %v313_v8 = vadd.f32 1.0, %v592_v6  ;;  %v316_v9 = vmul.f32 -0.5, %v592_v6  ;;  %v319_v16 = vand.u32 2147483647, %v592_v6 }
  0x1f   :  { %v596_v10 = vpop.eup %595  ;;  %v304_v11 = vadd.f32 1.0, %v594_v7  ;;  %v307_v12 = vmul.f32 -0.5, %v594_v7  ;;  %v310_v18 = vand.u32 2147483647, %v594_v7 }
  0x20   :  { %597 = vlog2.f32 %v313_v8  ;;  %v295_v13 = vadd.f32 1.0, %v596_v10  ;;  %v317_v14 = vadd.f32 1.0, %v316_v9  ;;  %v298_v15 = vmul.f32 -0.5, %v596_v10 }
  0x21   :  { %599 = vlog2.f32 %v304_v11  ;;  %v308_v17 = vadd.f32 1.0, %v307_v12  ;;  %v301_v20 = vand.u32 2147483647, %v596_v10  ;;  %vm879_vm0 = vcmp.lt.f32.partialorder %v319_v16, 0.0004427343  ;;  %v940_v11 = vld [vmem:[#allocation8 + $0x50] sm:$0xff] }
  0x22   :  { %601 = vlog2.f32 %v295_v13  ;;  %v299_v19 = vadd.f32 1.0, %v298_v15  ;;  %v318_v21 = vmul.f32 %v592_v6, %v317_v14  ;;  %vm883_vm2 = vcmp.lt.f32.partialorder %v310_v18, 0.0004427343  ;;  %v934_v6 = vld [vmem:[#allocation8 + $0x48] sm:$0xff]  ;;  %v943_v14 = vld [vmem:[#allocation8 + $0x58] sm:$0xff] }
  0x23   :  { %v309_v24 = vmul.f32 %v594_v7, %v308_v17  ;;  %vm889_vm4 = vcmp.lt.f32.partialorder %v301_v20, 0.0004427343  ;;  %1450 = vst [vmem:[#allocation25_spill] sm:$0xff] %v934_v6  ;;  %v158_v7 = vmul.f32 1.442695, %v921_v61  ;;  %vm141_vm9 = vcmp.lt.f32.partialorder %v943_v14, 50.0 }
  0x24   :  { %v300_v28 = vmul.f32 %v596_v10, %v299_v19  ;;  %v160_v10 = vmul.f32 1.442695, %v926_v1  ;;  %v164_v15 = vmul.f32 1.442695, %v934_v6  ;;  %v948_v19 = vld [vmem:[#allocation8 + $0x60] sm:$0xff] }
  0x25   :  { %v166_v20 = vmul.f32 1.442695, %v940_v11  ;;  %v168_v23 = vmul.f32 1.442695, %v943_v14  ;;  %vm142_vm10 = vcmp.lt.f32.partialorder %v948_v19, 50.0 }
  0x26   :  { %v598_v22 = vpop.eup %597 }
  0x27   :  { %v600_v25 = vpop.eup %599  ;;  %v315_v26 = vmul.f32 0.6931472, %v598_v22 }
  0x28   :  { %v602_v29 = vpop.eup %601  ;;  %v306_v31 = vmul.f32 0.6931472, %v600_v25 }
  0x29   :  { %v321_v33 = vsel %vm879_vm0, %v318_v21, %v315_v26  ;;  %v297_v34 = vmul.f32 0.6931472, %v602_v29  ;;  %v958_v26 = vmul.f32 %v901_v40, %v901_v40 }
  0x2a   :  { %v337_v37 = vsel %vm145_vm1, %v321_v33, %v113_v0  ;;  %v312_v39 = vsel %vm883_vm2, %v309_v24, %v306_v31  ;;  %v170_v33 = vmul.f32 1.442695, %v948_v19  ;;  %vm135_vm1 = vcmp.lt.f32.partialorder %v919_v60, 50.0 }
  0x2b   :  { %v353_v41 = vmul.f32 %v337_v37, %v887_v30  ;;  %v336_v42 = vsel %vm144_vm3, %v312_v39, %v112_v2  ;;  %v303_v43 = vsel %vm889_vm4, %v300_v28, %v297_v34  ;;  %v154_v2 = vmul.f32 1.442695, %v917_v57  ;;  %1453 = vst [vmem:[#allocation28_spill] sm:$0xff] %v958_v26 }
  0x2c   :  { %v335_v46 = vsel %vm143_vm5, %v303_v43, %v111_v4  ;;  %v352_v50 = vmul.f32 %v336_v42, %v897_v38  ;;  %v931_v4 = vld [vmem:[#allocation8 + $0x40] sm:$0xff] }
  0x2d   :  { %v369_v49 = vadd.f32 %v353_v41, %v97_v36  ;;  %v351_v51 = vmul.f32 %v335_v46, %v901_v40  ;;  %603 = vlog2.f32 %v335_v46  ;;  %1449 = vst [vmem:[#allocation24_spill] sm:$0xff] %v931_v4  ;;  %v162_v12 = vmul.f32 1.442695, %v931_v4 }
  0x2e   :  { %605 = vpow2.f32 %v146_v48  ;;  %v368_v58 = vadd.f32 %v352_v50, %v96_v52 }
  0x2f   :  { %526 = vmatpush.xpose.msra.mxu0 %v369_v49  ;;  %v367_v54 = vadd.f32 %v351_v51, %v95_v45  ;;  %607 = vpow2.f32 %v148_v53  ;;  %v962_v31 = vmul.f32 %v369_v49, %v369_v49 }
  0x30   :  { %609 = vpow2.f32 %v150_v56  ;;  %v964_v32 = vmul.f32 %v368_v58, %v368_v58 }
  0x31   :  { %v383_v59 = vmul.f32 %v367_v54, %v367_v54  ;;  %611 = vlog2.f32 %v337_v37  ;;  %1454 = vst [vmem:[#allocation29_spill] sm:$0xff] %v962_v31 }
  0x32   :  { %613 = vlog2.f32 %v336_v42 }
  0x33   :  { %v604_v63 = vpop.eup %603  ;;  %527 = vmatpush.xpose.msra.mxu0 %v368_v58  ;;  %v924_v0 = vmul.f32 0.5, %v383_v59  ;;  %615 = vpow2.f32 %v152_v62 }
  0x34   :  { %v929_v3 = vmul.f32 0.6931472, %v604_v63  ;;  %v606_v8 = vpop.eup %605  ;;  %617 = vpow2.f32 %v154_v2 }
  0x35   :  { %1446 = vst [vmem:[#allocation21_spill] sm:$0xff] %v924_v0  ;;  %v608_v13 = vpop.eup %607  ;;  %619 = vpow2.f32 %v156_v5  ;;  %v178_v17 = vadd.f32 1.0, %v606_v8  ;;  %v181_v21 = vmul.f32 -0.5, %v606_v8  ;;  %v184_v37 = vand.u32 2147483647, %v606_v8 }
  0x36   :  { %1448 = vst [vmem:[#allocation23_spill] sm:$0xff] %v929_v3  ;;  %v610_v16 = vpop.eup %609  ;;  %621 = vpow2.f32 %v158_v7  ;;  %v190_v24 = vmul.f32 -0.5, %v608_v13  ;;  %v187_v27 = vadd.f32 1.0, %v608_v13  ;;  %v193_v42 = vand.u32 2147483647, %v608_v13 }
  0x37   :  { %528 = vmatpush.xpose.msra.mxu0 %v367_v54  ;;  %v946_v18 = vpop.eup %611  ;;  %623 = vpow2.f32 %v160_v10  ;;  %v199_v28 = vmul.f32 -0.5, %v610_v16  ;;  %v182_v36 = vadd.f32 1.0, %v181_v21  ;;  %v196_v39 = vadd.f32 1.0, %v610_v16 }
  0x38   :  { %1451 = vst [vmem:[#allocation26_spill] sm:$0xff] %v946_v18  ;;  %v951_v22 = vpop.eup %613  ;;  %625 = vpow2.f32 %v162_v12  ;;  %v191_v41 = vadd.f32 1.0, %v190_v24  ;;  %v202_v51 = vand.u32 2147483647, %v610_v16  ;;  %vm984_vm6 = vcmp.lt.f32.partialorder %v184_v37, 0.0004427343 }
  0x39   :  { %1452 = vst [vmem:[#allocation27_spill] sm:$0xff] %v951_v22  ;;  %v954_v25 = vpop.eup %615  ;;  %627 = vpow2.f32 %v164_v15  ;;  %v200_v46 = vadd.f32 1.0, %v199_v28  ;;  %v982_v56 = vmul.f32 %v606_v8, %v182_v36  ;;  %vm991_vm7 = vcmp.lt.f32.partialorder %v193_v42, 0.0004427343 }
  0x3a   :  { %v960_v29 = vpop.eup %617  ;;  %629 = vlog2.f32 %v178_v17  ;;  %v208_v43 = vmul.f32 -0.5, %v954_v25  ;;  %v205_v48 = vadd.f32 1.0, %v954_v25  ;;  %v989_v63 = vmul.f32 %v608_v13, %v191_v41  ;;  %v1222_v13 = vld [vmem:[#allocation9 + $0x30] sm:$0xff] }
  0x3b   :  { %v967_v34 = vpop.eup %619  ;;  %631 = vpow2.f32 %v166_v20  ;;  %v217_v49 = vmul.f32 -0.5, %v960_v29  ;;  %v214_v52 = vadd.f32 1.0, %v960_v29  ;;  %v998_v8 = vmul.f32 %v610_v16, %v200_v46 }
  0x3c   :  { %v969_v40 = vpop.eup %621  ;;  %633 = vpow2.f32 %v168_v23  ;;  %v226_v53 = vmul.f32 -0.5, %v967_v34  ;;  %v223_v59 = vadd.f32 1.0, %v967_v34  ;;  %v209_v5 = vadd.f32 1.0, %v208_v43 }
  0x3d   :  { %v972_v45 = vpop.eup %623  ;;  %635 = vlog2.f32 %v187_v27  ;;  %v232_v7 = vadd.f32 1.0, %v969_v40  ;;  %v218_v12 = vadd.f32 1.0, %v217_v49  ;;  %vm1003_vm8 = vcmp.lt.f32.partialorder %v202_v51, 0.0004427343 }
  0x3e   :  { %v976_v50 = vpop.eup %625  ;;  %637 = vpow2.f32 %v170_v33  ;;  %v241_v15 = vadd.f32 1.0, %v972_v45  ;;  %v227_v20 = vadd.f32 1.0, %v226_v53  ;;  %v235_v21 = vmul.f32 -0.5, %v969_v40 }
  0x3f   :  { %v980_v54 = vpop.eup %627  ;;  %639 = vlog2.f32 %v196_v39  ;;  %v250_v23 = vadd.f32 1.0, %v976_v50  ;;  %v211_v16 = vand.u32 2147483647, %v954_v25  ;;  %v1016_v36 = vmul.f32 %v954_v25, %v209_v5 }
  0x40   :  { %v630_v62 = vpop.eup %629  ;;  %641 = vlog2.f32 %v205_v48  ;;  %v259_v28 = vadd.f32 1.0, %v980_v54  ;;  %v220_v37 = vand.u32 2147483647, %v960_v29  ;;  %v229_v39 = vand.u32 2147483647, %v967_v34 }
  0x41   :  { %v996_v10 = vpop.eup %631  ;;  %643 = vlog2.f32 %v214_v52  ;;  %v1009_v27 = vmul.f32 0.6931472, %v630_v62  ;;  %v1021_v42 = vmul.f32 %v960_v29, %v218_v12  ;;  %v238_v43 = vand.u32 2147483647, %v969_v40  ;;  %v1198_v52 = vld [vmem:[#allocation9 + $0x18] sm:$0xff]  ;;  %v1200_v12 = vld [vmem:[#allocation9 + $0x50] sm:$0xff] }
  0x42   :  { %v1001_v17 = vpop.eup %633  ;;  %645 = vlog2.f32 %v223_v59  ;;  %v268_v46 = vadd.f32 1.0, %v996_v10  ;;  %v1028_v49 = vmul.f32 %v967_v34, %v227_v20  ;;  %v236_v25 = vadd.f32 1.0, %v235_v21 }
  0x43   :  { %v636_v24 = vpop.eup %635  ;;  %647 = vlog2.f32 %v232_v7  ;;  %v277_v29 = vadd.f32 1.0, %v1001_v17  ;;  %v280_v53 = vmul.f32 -0.5, %v1001_v17  ;;  %v244_v5 = vmul.f32 -0.5, %v972_v45 }
  0x44   :  { %v1013_v33 = vpop.eup %637  ;;  %649 = vlog2.f32 %v241_v15  ;;  %v1025_v48 = vmul.f32 0.6931472, %v636_v24  ;;  %vm1042_vm11 = vcmp.lt.f32.partialorder %v211_v16, 0.0004427343  ;;  %v247_v15 = vand.u32 2147483647, %v972_v45 }
  0x45   :  { %v640_v41 = vpop.eup %639  ;;  %651 = vlog2.f32 %v250_v23  ;;  %v286_v34 = vadd.f32 1.0, %v1013_v33  ;;  %v271_v20 = vmul.f32 -0.5, %v996_v10  ;;  %v289_v21 = vmul.f32 -0.5, %v1013_v33 }
  0x46   :  { %v642_v51 = vpop.eup %641  ;;  %653 = vlog2.f32 %v259_v28  ;;  %v1036_v62 = vmul.f32 0.6931472, %v640_v41  ;;  %vm1053_vm12 = vcmp.lt.f32.partialorder %v220_v37, 0.0004427343  ;;  %vm1057_vm13 = vcmp.lt.f32.partialorder %v229_v39, 0.0004427343 }
  0x47   :  { %v644_v59 = vpop.eup %643  ;;  %655 = vlog2.f32 %v268_v46  ;;  %v253_v41 = vmul.f32 -0.5, %v976_v50  ;;  %v281_v46 = vadd.f32 1.0, %v280_v53  ;;  %v1063_v9 = vmul.f32 0.6931472, %v642_v51  ;;  %v1220_v28 = vld [vmem:[#allocation9 + $0x28] sm:$0xff] }
  0x48   :  { %v646_v7 = vpop.eup %645  ;;  %657 = vlog2.f32 %v277_v29  ;;  %vm1065_vm15 = vcmp.lt.f32.partialorder %v238_v43, 0.0004427343  ;;  %v262_v37 = vmul.f32 -0.5, %v980_v54  ;;  %v283_v39 = vand.u32 2147483647, %v1001_v17 }
  0x49   :  { %v648_v23 = vpop.eup %647  ;;  %659 = vlog2.f32 %v286_v34  ;;  %v290_v24 = vadd.f32 1.0, %v289_v21  ;;  %v1072_v0 = vmul.f32 0.6931472, %v644_v59  ;;  %v1075_v53 = vmul.f32 %v969_v40, %v236_v25  ;;  %v1496_v40 = vld [vmem:[#allocation25_spill] sm:$0xff] }
  0x4a   :  { %v650_v29 = vpop.eup %649  ;;  %v245_v34 = vadd.f32 1.0, %v244_v5  ;;  %v292_v51 = vand.u32 2147483647, %v1013_v33  ;;  %v1085_v59 = vmul.f32 0.6931472, %v646_v7  ;;  %v272_v25 = vadd.f32 1.0, %v271_v20 }
  0x4b   :  { %v652_v3 = vpop.eup %651  ;;  %vm1087_vm4 = vcmp.lt.f32.partialorder %v247_v15, 0.0004427343  ;;  %v254_v30 = vadd.f32 1.0, %v253_v41  ;;  %v256_v26 = vand.u32 2147483647, %v976_v50  ;;  %v282_v15 = vmul.f32 %v1001_v17, %v281_v46  ;;  %v83_v17 = vld [vmem:[#allocation6 + $0x8] sm:$0xff] }
  0x4c   :  { %v654_v43 = vpop.eup %653  ;;  %v274_v7 = vand.u32 2147483647, %v996_v10  ;;  %v234_v20 = vmul.f32 0.6931472, %v648_v23  ;;  %v263_v38 = vadd.f32 1.0, %v262_v37  ;;  %v291_v31 = vmul.f32 %v1013_v33, %v290_v24 }
  0x4d   :  { %v656_v5 = vpop.eup %655  ;;  %vm1100_vm5 = vcmp.lt.f32.partialorder %v283_v39, 0.0004427343  ;;  %v246_v22 = vmul.f32 %v972_v45, %v245_v34  ;;  %v265_v1 = vand.u32 2147483647, %v980_v54  ;;  %vm1107_vm3 = vcmp.lt.f32.partialorder %v292_v51, 0.0004427343 }
  0x4e   :  { %v658_v21 = vpop.eup %657  ;;  %v243_v46 = vmul.f32 0.6931472, %v650_v29  ;;  %v270_v6 = vmul.f32 0.6931472, %v656_v5  ;;  %v273_v23 = vmul.f32 %v996_v10, %v272_v25  ;;  %v1112_v39 = vld [vmem:[#allocation9 + $0x60] sm:$0xff]  ;;  %v255_v33 = vmul.f32 %v976_v50, %v254_v30  ;;  %v92_v34 = vld [vmem:[#allocation6 + $0x50] sm:$0xff] }
  0x4f   :  { %v660_v41 = vpop.eup %659  ;;  %v279_v61 = vmul.f32 0.6931472, %v658_v21  ;;  %v252_v4 = vmul.f32 0.6931472, %v652_v3  ;;  %vm1115_vm14 = vcmp.lt.f32.partialorder %v274_v7, 0.0004427343  ;;  %v264_v10 = vmul.f32 %v980_v54, %v263_v38 }
  0x50   :  { %v288_v37 = vmul.f32 0.6931472, %v660_v41  ;;  %vm1121_vm0 = vcmp.lt.f32.partialorder %v256_v26, 0.0004427343  ;;  %v261_v29 = vmul.f32 0.6931472, %v654_v43  ;;  %v213_v30 = vsel %vm1042_vm11, %v1016_v36, %v1063_v9 }
  0x51   :  { %v285_v45 = vsel %vm1100_vm5, %v282_v15, %v279_v61  ;;  %v94_v3 = vld [vmem:[#allocation6 + $0x60] sm:$0xff]  ;;  %v1128_v21 = vld [vmem:[#allocation9 + $0x58] sm:$0xff]  ;;  %vm1134_vm2 = vcmp.lt.f32.partialorder %v265_v1, 0.0004427343  ;;  %v222_v26 = vsel %vm1053_vm12, %v1021_v42, %v1072_v0  ;;  %v231_v1 = vsel %vm1057_vm13, %v1028_v49, %v1085_v59  ;;  %v1177_v42 = vld [vmem:[#allocation9 + $0x8] sm:$0xff] }
  0x52   :  { %v294_v51 = vsel %vm1107_vm3, %v291_v31, %v288_v37  ;;  %v1141_v18 = vsel %vm141_vm9, %v285_v45, %v943_v14  ;;  %v276_v9 = vsel %vm1115_vm14, %v273_v23, %v270_v6  ;;  %v249_v31 = vsel %vm1087_vm4, %v246_v22, %v243_v46  ;;  %v93_v54 = vld [vmem:[#allocation6 + $0x58] sm:$0xff]  ;;  %v1175_v36 = vld [vmem:[#allocation9] sm:$0xff]  ;;  %v1196_v49 = vld [vmem:[#allocation9 + $0x10] sm:$0xff] }
  0x53   :  { %v1146_v38 = vsel %vm142_vm10, %v294_v51, %v948_v19  ;;  %v240_v19 = vsel %vm1065_vm15, %v1075_v53, %v234_v20  ;;  %v258_v0 = vsel %vm1121_vm0, %v255_v33, %v252_v4  ;;  %v1481_v50 = vsel %vm984_vm6, %v982_v56, %v1009_v27  ;;  %v1245_v53 = vld [vmem:[#allocation9 + $0x38] sm:$0xff]  ;;  %v1249_v43 = vld [vmem:[#allocation9 + $0x48] sm:$0xff]  ;;  %v1498_v15 = vld [vmem:[#allocation27_spill] sm:$0xff] }
  0x54   :  { %v350_v14 = vmul.f32 %v1146_v38, %v1112_v39  ;;  %vm1482_vm9 = vcmp.lt.f32.partialorder %v895_v35, 50.0  ;;  %v267_v22 = vsel %vm1134_vm2, %v264_v10, %v261_v29  ;;  %v1483_v4 = vsel %vm991_vm7, %v989_v63, %v1025_v48  ;;  %v1218_v48 = vld [vmem:[#allocation9 + $0x20] sm:$0xff]  ;;  %v84_v45 = vld [vmem:[#allocation6 + $0x10] sm:$0xff] }
  0x55   :  { %v322_v6 = vsel %vm1482_vm9, %v1481_v50, %v895_v35  ;;  %vm1484_vm10 = vcmp.lt.f32.partialorder %v906_v44, 50.0  ;;  %v349_v35 = vmul.f32 %v1141_v18, %v1128_v21  ;;  %v1194_v27 = vmul.f32 0.5, %v964_v32  ;;  %v82_v41 = vld [vmem:[#allocation6] sm:$0xff] }
  0x56   :  { %v323_v56 = vsel %vm1484_vm10, %v1483_v4, %v906_v44  ;;  %v1191_v58 = vadd.f32 %v350_v14, %v94_v3  ;;  %v1485_v44 = vsel %vm1003_vm8, %v998_v8, %v1036_v62  ;;  %vm1486_vm6 = vcmp.lt.f32.partialorder %v908_v47, 50.0  ;;  %v1492_v62 = vld [vmem:[#allocation22_spill] sm:$0xff]  ;;  %v1499_v33 = vld [vmem:[#allocation29_spill] sm:$0xff]  ;;  %v85_v3 = vld [vmem:[#allocation6 + $0x18] sm:$0xff] }
  0x57   :  { %v324_v63 = vsel %vm1486_vm6, %v1485_v44, %v908_v47  ;;  %vm1487_vm7 = vcmp.lt.f32.partialorder %v914_v55, 50.0  ;;  %vm1488_vm11 = vcmp.lt.f32.partialorder %v940_v11, 50.0  ;;  %vm1489_vm8 = vcmp.lt.f32.partialorder %v917_v57, 50.0  ;;  %v87_v14 = vld [vmem:[#allocation6 + $0x28] sm:$0xff]  ;;  %v90_v4 = vld [vmem:[#allocation6 + $0x40] sm:$0xff] }
  0x58   :  { %v325_v32 = vsel %vm1487_vm7, %v213_v30, %v914_v55  ;;  %v1216_v2 = vsel %vm1488_vm11, %v276_v9, %v940_v11  ;;  %v1227_v8 = vsel %vm1489_vm8, %v222_v26, %v917_v57  ;;  %v1232_v47 = vsel %vm135_vm1, %v231_v1, %v919_v60  ;;  %v1490_v55 = vld [vmem:[#allocation20_spill] sm:$0xff]  ;;  %529 = vmatpush.xpose.msra.mxu0 %v1191_v58  ;;  %v1247_v57 = vld [vmem:[#allocation9 + $0x40] sm:$0xff] }
  0x59   :  { %vm1491_vm12 = vcmp.lt.f32.partialorder %v1490_v55, 50.0  ;;  %vm1493_vm13 = vcmp.lt.f32.partialorder %v1492_v62, 50.0  ;;  %v1494_v60 = vld [vmem:[#allocation24_spill] sm:$0xff]  ;;  %vm1497_vm15 = vcmp.lt.f32.partialorder %v1496_v40, 50.0  ;;  %v338_v5 = vmul.f32 %v322_v6, %v1175_v36  ;;  %v86_v30 = vld [vmem:[#allocation6 + $0x20] sm:$0xff] }
  0x5a   :  { %v1237_v11 = vsel %vm1491_vm12, %v240_v19, %v1490_v55  ;;  %v1242_v16 = vsel %vm1493_vm13, %v249_v31, %v1492_v62  ;;  %vm1495_vm14 = vcmp.lt.f32.partialorder %v1494_v60, 50.0  ;;  %v1259_v25 = vsel %vm1497_vm15, %v267_v22, %v1496_v40  ;;  %v88_v19 = vld [vmem:[#allocation6 + $0x30] sm:$0xff]  ;;  %v89_v31 = vld [vmem:[#allocation6 + $0x38] sm:$0xff] }
  0x5b   :  { %v1254_v59 = vsel %vm1495_vm14, %v258_v0, %v1494_v60  ;;  %v339_v7 = vmul.f32 %v323_v56, %v1177_v42  ;;  %v1264_v20 = vmul.f32 0.6931472, %v1498_v15  ;;  %v340_v46 = vmul.f32 %v324_v63, %v1196_v49 }
  0x5c   :  { %v348_v23 = vmul.f32 %v1216_v2, %v1200_v12  ;;  %v1269_v37 = vadd.f32 %v349_v35, %v93_v54  ;;  %v1272_v24 = vmul.f32 0.5, %v1499_v33  ;;  %v341_v29 = vmul.f32 %v325_v32, %v1198_v52  ;;  %v1500_v54 = vld [vmem:[#allocation26_spill] sm:$0xff]  ;;  %v1502_v33 = vld [vmem:[#allocation28_spill] sm:$0xff] }
  0x5d   :  { %v342_v10 = vmul.f32 %v1227_v8, %v1218_v48  ;;  %v343_v51 = vmul.f32 %v1232_v47, %v1220_v28  ;;  %v344_v61 = vmul.f32 %v1237_v11, %v1222_v13  ;;  %v345_v26 = vmul.f32 %v1242_v16, %v1245_v53  ;;  %v91_v35 = vld [vmem:[#allocation6 + $0x48] sm:$0xff] }
  0x5e   :  { %v346_v1 = vmul.f32 %v1254_v59, %v1247_v57  ;;  %v347_v9 = vmul.f32 %v1259_v25, %v1249_v43  ;;  %530 = vmatpush.xpose.msra.mxu0 %v1269_v37  ;;  %v1288_v0 = vadd.f32 %v338_v5, %v82_v41  ;;  %v1290_v50 = vadd.f32 %v339_v7, %v83_v17 }
  0x5f   :  { %661 = vlog2.f32 %v322_v6  ;;  %v1293_v22 = vmul.f32 0.6931472, %v1500_v54  ;;  %v1295_v44 = vadd.f32 %v340_v46, %v84_v45  ;;  %v364_v55 = vadd.f32 %v348_v23, %v92_v34  ;;  %v1501_v46 = vld [vmem:[#allocation19_spill] sm:$0xff] }
  0x60   :  { %663 = vlog2.f32 %v323_v56  ;;  %v1299_v60 = vadd.f32 %v341_v29, %v85_v3  ;;  %v1301_v40 = vadd.f32 %v342_v10, %v86_v30  ;;  %v1305_v5 = vadd.f32 %v343_v51, %v87_v14 }
  0x61   :  { %665 = vlog2.f32 %v324_v63  ;;  %v1307_v7 = vadd.f32 %v344_v61, %v88_v19  ;;  %v361_v15 = vadd.f32 %v345_v26, %v89_v31  ;;  %v362_v41 = vadd.f32 %v346_v1, %v90_v4 }
  0x62   :  { %531 = vmatpush.xpose.msra.mxu0 %v364_v55  ;;  %v363_v17 = vadd.f32 %v347_v9, %v91_v35  ;;  %v370_v56 = vmul.f32 %v1288_v0, %v1288_v0  ;;  %667 = vlog2.f32 %v325_v32  ;;  %v464_v23 = vmul.f32 %v1501_v46, %v1501_v46 }
  0x63   :  { %v1314_v63 = vmul.f32 0.5, %v1502_v33  ;;  %v371_v45 = vmul.f32 %v1290_v50, %v1290_v50  ;;  %v372_v29 = vmul.f32 %v1295_v44, %v1295_v44  ;;  %v373_v10 = vmul.f32 %v1299_v60, %v1299_v60 }
  0x64   :  { %v374_v51 = vmul.f32 %v1301_v40, %v1301_v40  ;;  %669 = vlog2.f32 %v1227_v8  ;;  %v375_v3 = vmul.f32 %v1305_v5, %v1305_v5  ;;  %v376_v30 = vmul.f32 %v1307_v7, %v1307_v7 }
  0x65   :  { %v662_v34 = vpop.eup %661  ;;  %v377_v61 = vmul.f32 %v361_v15, %v361_v15  ;;  %671 = vlog2.f32 %v1232_v47  ;;  %v1330_v1 = vmul.f32 %v362_v41, %v362_v41  ;;  %v1332_v9 = vmul.f32 %v363_v17, %v363_v17 }
  0x66   :  { %v664_v32 = vpop.eup %663  ;;  %532 = vmatpush.xpose.msra.mxu0 %v363_v17  ;;  %v386_v14 = vmul.f32 0.5, %v370_v56  ;;  %v450_v8 = vmul.f32 %v1175_v36, %v1175_v36  ;;  %v387_v19 = vmul.f32 0.5, %v371_v45  ;;  %v403_v31 = vmul.f32 0.6931472, %v662_v34 }
  0x67   :  { %v666_v26 = vpop.eup %665  ;;  %v405_v54 = vmul.f32 0.6931472, %v664_v32  ;;  %v451_v4 = vmul.f32 %v1177_v42, %v1177_v42  ;;  %v1338_v46 = vmul.f32 %v364_v55, %v364_v55  ;;  %v388_v47 = vmul.f32 0.5, %v372_v29  ;;  %v1503_v55 = vld [vmem:[#allocation18_spill] sm:$0xff] }
  0x68   :  { %v668_v35 = vpop.eup %667  ;;  %v389_v33 = vmul.f32 0.5, %v373_v10  ;;  %673 = vlog2.f32 %v1237_v11  ;;  %v390_v6 = vmul.f32 0.5, %v374_v51  ;;  %v407_v17 = vmul.f32 0.6931472, %v666_v26 }
  0x69   :  { %675 = vlog2.f32 %v1242_v16  ;;  %v452_v36 = vmul.f32 %v1196_v49, %v1196_v49  ;;  %v1344_v45 = vmul.f32 0.5, %v375_v3  ;;  %v453_v42 = vmul.f32 %v1198_v52, %v1198_v52 }
  0x6a   :  { %533 = vmatpush.xpose.msra.mxu0 %v362_v41  ;;  %v670_v56 = vpop.eup %669  ;;  %v465_v34 = vmul.f32 %v1503_v55, %v1503_v55  ;;  %v466_v29 = vmul.f32 0.5, %v450_v8  ;;  %v409_v11 = vmul.f32 0.6931472, %v668_v35  ;;  %v434_v51 = vsub.f32 %v386_v14, %v403_v31 }
  0x6b   :  { %v672_v10 = vpop.eup %671  ;;  %v435_v32 = vsub.f32 %v387_v19, %v405_v54  ;;  %v467_v26 = vmul.f32 0.5, %v451_v4  ;;  %v1350_v16 = vmul.f32 0.5, %v376_v30  ;;  %v1352_v62 = vmul.f32 0.5, %v377_v61 }
  0x6c   :  { %677 = vlog2.f32 %v1254_v59  ;;  %v454_v49 = vmul.f32 %v1218_v48, %v1218_v48  ;;  %v411_v41 = vmul.f32 0.6931472, %v670_v56  ;;  %v436_v52 = vsub.f32 %v388_v47, %v407_v17  ;;  %v1504_v56 = vld [vmem:[#allocation21_spill] sm:$0xff] }
  0x6d   :  { %v455_v3 = vmul.f32 %v1220_v28, %v1220_v28  ;;  %v468_v8 = vmul.f32 0.5, %v452_v36  ;;  %v413_v14 = vmul.f32 0.6931472, %v672_v10  ;;  %679 = vlog2.f32 %v1259_v25 }
  0x6e   :  { %534 = vmatpush.xpose.msra.mxu0 %v361_v15  ;;  %v674_v35 = vpop.eup %673  ;;  %v469_v30 = vmul.f32 0.5, %v453_v42  ;;  %v480_v19 = vmul.f32 0.5, %v464_v23  ;;  %v437_v31 = vsub.f32 %v389_v33, %v409_v11  ;;  %v481_v54 = vmul.f32 0.5, %v465_v34 }
  0x6f   :  { %v676_v61 = vpop.eup %675  ;;  %v482_v59 = vsub.f32 %v434_v51, %v466_v29  ;;  %v483_v4 = vsub.f32 %v435_v32, %v467_v26  ;;  %681 = vlog2.f32 %v1216_v2  ;;  %v456_v48 = vmul.f32 %v1222_v13, %v1222_v13  ;;  %v1505_v2 = vld [vmem:[#allocation23_spill] sm:$0xff] }
  0x70   :  { %v457_v28 = vmul.f32 %v1245_v53, %v1245_v53  ;;  %v470_v15 = vmul.f32 0.5, %v454_v49  ;;  %v415_v47 = vmul.f32 0.6931472, %v674_v35  ;;  %v438_v17 = vsub.f32 %v390_v6, %v411_v41 }
  0x71   :  { %v471_v36 = vmul.f32 0.5, %v455_v3  ;;  %v484_v25 = vsub.f32 %v436_v52, %v468_v8  ;;  %v417_v33 = vmul.f32 0.6931472, %v676_v61  ;;  %683 = vlog2.f32 %v1141_v18 }
  0x72   :  { %535 = vmatpush.xpose.msra.mxu0 %v1307_v7  ;;  %v678_v23 = vpop.eup %677  ;;  %v1506_v42 = vsub.f32 %v1504_v56, %v1505_v2  ;;  %v1507_v13 = vsub.f32 %v1194_v27, %v1264_v20  ;;  %v439_v6 = vsub.f32 %v1344_v45, %v413_v14  ;;  %v485_v34 = vsub.f32 %v437_v31, %v469_v30 }
  0x73   :  { %v1508_v7 = vsub.f32 %v1272_v24, %v1293_v22  ;;  %v498_v18 = vadd.f32 %v483_v4, %v482_v59  ;;  %v680_v10 = vpop.eup %679  ;;  %v394_v11 = vmul.f32 0.5, %v1330_v1  ;;  %685 = vlog2.f32 %v1146_v38 }
  0x74   :  { %v1371_v55 = vsub.f32 %v1506_v42, %v1314_v63  ;;  %v1376_v53 = vsub.f32 %v1507_v13, %v480_v19  ;;  %v458_v63 = vmul.f32 %v1247_v57, %v1247_v57  ;;  %v472_v27 = vmul.f32 0.5, %v456_v48 }
  0x75   :  { %v1382_v29 = vsub.f32 %v1508_v7, %v481_v54  ;;  %v419_v20 = vmul.f32 0.6931472, %v678_v23  ;;  %v440_v51 = vsub.f32 %v1350_v16, %v415_v47  ;;  %v486_v45 = vsub.f32 %v438_v17, %v470_v15  ;;  %v682_v24 = vpop.eup %681 }
  0x76   :  { %v499_v32 = vadd.f32 %v498_v18, %v484_v25  ;;  %536 = vmatpush.xpose.msra.mxu0 %v1305_v5  ;;  %v381_v22 = vmul.f32 %v1269_v37, %v1269_v37  ;;  %v395_v26 = vmul.f32 0.5, %v1332_v9  ;;  %v459_v38 = vmul.f32 %v1249_v43, %v1249_v43 }
  0x77   :  { %v473_v1 = vmul.f32 0.5, %v457_v28  ;;  %v421_v49 = vmul.f32 0.6931472, %v680_v10  ;;  %v441_v57 = vsub.f32 %v1352_v62, %v417_v33  ;;  %v487_v41 = vsub.f32 %v439_v6, %v471_v36  ;;  %v684_v16 = vpop.eup %683 }
  0x78   :  { %v500_v52 = vadd.f32 %v499_v32, %v485_v34  ;;  %v382_v3 = vmul.f32 %v1191_v58, %v1191_v58  ;;  %v396_v5 = vmul.f32 0.5, %v1338_v46  ;;  %v460_v37 = vmul.f32 %v1200_v12, %v1200_v12 }
  0x79   :  { %v474_v8 = vmul.f32 0.5, %v458_v63  ;;  %v423_v9 = vmul.f32 0.6931472, %v682_v24  ;;  %v442_v35 = vsub.f32 %v394_v11, %v419_v20  ;;  %v488_v14 = vsub.f32 %v440_v51, %v472_v27  ;;  %v686_v30 = vpop.eup %685 }
  0x7a   :  { %v501_v43 = vadd.f32 %v500_v52, %v486_v45  ;;  %537 = vmatpush.xpose.msra.mxu0 %v1301_v40  ;;  %v397_v62 = vmul.f32 0.5, %v381_v22  ;;  %v461_v19 = vmul.f32 %v1128_v21, %v1128_v21  ;;  %v475_v61 = vmul.f32 0.5, %v459_v38 }
  0x7b   :  { %v425_v31 = vmul.f32 0.6931472, %v684_v16  ;;  %v443_v58 = vsub.f32 %v395_v26, %v421_v49  ;;  %v489_v54 = vsub.f32 %v441_v57, %v473_v1  ;;  %v398_v59 = vmul.f32 0.5, %v382_v3 }
  0x7c   :  { %v502_v46 = vadd.f32 %v501_v43, %v487_v41  ;;  %v462_v12 = vmul.f32 %v1112_v39, %v1112_v39  ;;  %v476_v4 = vmul.f32 0.5, %v460_v37  ;;  %v427_v48 = vmul.f32 0.6931472, %v686_v30 }
  0x7d   :  { %v444_v28 = vsub.f32 %v396_v5, %v423_v9  ;;  %v490_v15 = vsub.f32 %v442_v35, %v474_v8  ;;  %v445_v40 = vsub.f32 %v397_v62, %v425_v31  ;;  %v477_v17 = vmul.f32 0.5, %v461_v19 }
  0x7e   :  { %v503_v47 = vadd.f32 %v502_v46, %v488_v14  ;;  %538 = vmatpush.xpose.msra.mxu0 %v1299_v60  ;;  %v491_v36 = vsub.f32 %v443_v58, %v475_v61  ;;  %v446_v25 = vsub.f32 %v398_v59, %v427_v48  ;;  %v478_v23 = vmul.f32 0.5, %v462_v12  ;;  %v525_v60 = vld [vmem:[#allocation2] sm:$0xff] }
  0x7f   :  { %v492_v33 = vsub.f32 %v444_v28, %v476_v4  ;;  %v493_v2 = vsub.f32 %v445_v40, %v477_v17 }
  0x80   :  { %v504_v21 = vadd.f32 %v503_v47, %v489_v54  ;;  %v494_v39 = vsub.f32 %v446_v25, %v478_v23 }
  0x82   :  { %v505_v56 = vadd.f32 %v504_v21, %v490_v15  ;;  %539 = vmatpush.xpose.msra.mxu0 %v1295_v44 }
  0x84   :  { %v506_v42 = vadd.f32 %v505_v56, %v491_v36 }
  0x86   :  { %v507_v13 = vadd.f32 %v506_v42, %v492_v33  ;;  %540 = vmatpush.xpose.msra.mxu0 %v1290_v50 }
  0x88   :  { %v508_v6 = vadd.f32 %v507_v13, %v493_v2 }
  0x8a   :  { %v509_v34 = vadd.f32 %v508_v6, %v494_v39  ;;  %541 = vmatpush.xpose.msra.mxu0 %v1288_v0 }
  0x8c   :  { %v510_v7 = vadd.f32 %v509_v34, %v1371_v55 }
  0x8d   :  { %542 = vmatmul.f32.vlgmr.msra.gmra.mxu0 %v525_v60 }
  0x8e   :  { %v511_v18 = vadd.f32 %v510_v7, %v1376_v53 }
  0x90   :  { %v512_v10 = vadd.f32 %v511_v18, %v1382_v29 }
  0x92   :  { %513 = vadd.xlane.f32.xlu0 %v512_v10 }
 0x105   :  { %v514_v44 = vpop.xlane.xlu0 %513 }
 0x106   :  { %v515_v11 = vrot.slane %v514_v44, 4 }
 0x108   :  { %v516_v63 = vadd.f32 %v515_v11, %v514_v44 }
 0x10a   :  { %v517_v27 = vrot.slane %v516_v63, 2  ;;  %v543_v0 = vpop.f32.mrf.mxu0 }
 0x10b   :  { %546 = vst [vmem:[#allocation11] sm:$0xff] %v543_v0 }
 0x10c   :  { %v518_v20 = vadd.f32 %v517_v27, %v516_v63  ;;  %557 = dma.vmem_to_hbm [thread:$0]  %s553_s3, 128, %s555_s15, [#allocation4]  }
 0x10e   :  { %v519_v51 = vrot.slane %v518_v20, 1 }
 0x110   :  { %v520_v50 = vadd.f32 %v519_v51, %v518_v20 }
 0x112   :  { %581 = vpush %v520_v50 }
 0x143   :  { %s582_s19 = spop %581 }
 0x144   :  { %524 = sst [smem:[#allocation12]] %s582_s19 }
 0x145   :  { %566 = dma.smem_to_hbm %s836_s20, 16, %s564_s18, [#allocation5]  }
 0x146   :  { %825 = dma.done.wait [#allocation4], 128  }
 0x147   :  { %826 = vsyncadd [#allocation4], 4294967168 }
 0x148   :  { %827 = dma.done.wait [#allocation5], 16  }
 0x149   :  { %828 = vsyncadd [#allocation5], 4294967280 }
 0x14a   :  { %575 = sfence }
 0x14b   :  { %576 = vsyncpa [#allocation3], 1 }
 0x14c   :  { %577 = vsyncpa [#allocation7], 1 }
 0x14d   :  { %578 = vsyncpa [#allocation10], 1 }
 0x14e   :  { %579 = vsyncpa [#allocation4], 1 }
 0x14f   :  { %580 = vsyncpa [#allocation5], 1 }

</bundles_post_ra>
